<compile_context>
chip_gen: v7x
topology: tpu7x:2x2x1
jax: 0.10.0
libtpu: 0.0.40
codegen_flags: <defaults>
</compile_context>

<pallas_src>
import functools
import math

import numpy as np
import jax
import jax.numpy as jnp
from jax.experimental import pallas as pl
from jax.experimental.pallas import tpu as pltpu


def make_positional_encoding(d_model: int, max_len: int = 5000) -> np.ndarray:
    """Reference sinusoidal PE buffer (numpy), shape (max_len, 1, d_model) — matches PyTorch."""
    position = np.arange(0, max_len, dtype=np.float32)[:, None]
    div_term = np.exp(
        np.arange(0, d_model, 2, dtype=np.float32) * (-np.log(10000.0) / d_model)
    ).astype(np.float32)
    pe = np.zeros((max_len, d_model), dtype=np.float32)
    pe[:, 0::2] = np.sin(position * div_term)
    pe[:, 1::2] = np.cos(position * div_term)
    return pe[:, None, :]


def _pe_add_kernel(x_ref, o_ref, *, batch: int, d_model: int):
    # x_ref / o_ref: (ts, batch*d_model) tile of the [S, B*D] slab.
    ts = x_ref.shape[0]
    base = pl.program_id(0) * ts

    # Per-lane (d) pattern: rate = 1e4^(-2*(d//2)/D); even lanes -> sin, odd lanes -> cos.
    lane = jax.lax.broadcasted_iota(jnp.int32, (1, d_model), 1)           # (1, D)
    even = lane - (lane & 1)                                              # 2*(d//2)
    rate = jnp.exp(even.astype(jnp.float32) * (-math.log(10000.0) / d_model))
    is_odd = (lane & 1) == 1

    # Per-row sequence position (sublane iota; rows beyond S in a partial final block are
    # computed but masked on store by Pallas).
    pos = (base + jax.lax.broadcasted_iota(jnp.int32, (ts, 1), 0)).astype(jnp.float32)

    angle = pos * rate                                                    # (ts, D)
    pe_d = jnp.where(is_odd, jnp.cos(angle), jnp.sin(angle)).astype(x_ref.dtype)

    # Tile the length-D pattern across the batch along the lane axis -> (ts, B*D).
    pe = pe_d if batch == 1 else jnp.concatenate([pe_d] * batch, axis=1)

    o_ref[...] = x_ref[...] + pe


def _pick_block_seq(seq_len: int, row_bytes: int, itemsize: int,
                    target_bytes: int = 4 * 1024 * 1024) -> int:
    """Rows (seq positions) per tile: ~4 MiB per x tile, dtype-aware sublane rounding,
    and at least 2 grid steps when the slab would otherwise fit a single tile (v7x 2 TCs)."""
    sub = max(8, 32 // max(1, itemsize))          # f32: 8, bf16: 16, int8/fp8: 32
    ts = target_bytes // max(1, row_bytes)
    ts = max(sub, (int(ts) // sub) * sub)
    if ts >= seq_len:
        if seq_len >= 2 * sub:
            half = -(-seq_len // 2)               # ceil(seq_len / 2)
            ts = -(-half // sub) * sub            # round up to sublane multiple -> grid == 2
        else:
            ts = seq_len                          # tiny slab: full-dim block is legal
    return min(ts, seq_len)


def positional_encoding_forward(x, max_len: int = 5000):
    """x: (S, B, D). Returns x + pe[:S] (eval-mode dropout = identity)."""
    S, B, D = x.shape
    assert S <= max_len, "sequence longer than max_len"
    assert D % 2 == 0, "d_model must be even (as in the PyTorch module)"
    # Note: D a multiple of 128 gives fully lane-dense vld/vst; other D still works.

    itemsize = jnp.dtype(x.dtype).itemsize
    x2 = x.reshape(S, B * D)                      # free row-major reshape; lane dim = B*D
    row_bytes = B * D * itemsize

    ts = _pick_block_seq(S, row_bytes, itemsize)
    grid = (pl.cdiv(S, ts),)

    # Working set ~= 2x(in) + 2x(out) double buffers + ~1 tile of pe intermediate.
    tile_bytes = ts * row_bytes
    vmem_limit = int(min(56 << 20, max(16 << 20, 6 * tile_bytes + (2 << 20))))

    kernel = functools.partial(_pe_add_kernel, batch=B, d_model=D)
    out = pl.pallas_call(
        kernel,
        out_shape=jax.ShapeDtypeStruct((S, B * D), x.dtype),
        grid=grid,
        in_specs=[pl.BlockSpec((ts, B * D), lambda i: (i, 0))],
        out_specs=pl.BlockSpec((ts, B * D), lambda i: (i, 0)),
        input_output_aliases={0: 0},
        compiler_params=pltpu.CompilerParams(
            dimension_semantics=("parallel",),
            vmem_limit_bytes=vmem_limit,
        ),
    )(x2)
    return out.reshape(S, B, D)


def _check(seq_len: int, batch: int, d_model: int, max_len: int, seed: int):
    x = jax.random.normal(jax.random.PRNGKey(seed), (seq_len, batch, d_model),
                          dtype=jnp.float32)
    x_np = np.asarray(x)
    pe = make_positional_encoding(d_model, max_len=max_len)
    ref = x_np + pe[:seq_len]                      # eval-mode dropout = identity

    out = jax.block_until_ready(positional_encoding_forward(x, max_len=max_len))
    # In-kernel EUP exp/sin/cos vs numpy: a few-ulp difference scaled by |angle|,
    # well inside 1e-4 absolute for these positions.
    np.testing.assert_allclose(np.asarray(out), ref, rtol=1e-5, atol=1e-4)


if __name__ == "__main__":
    max_len = 5000
    # Small, lane-dense shape (D multiple of 128): single grid step.
    _check(seq_len=8, batch=2, d_model=128, max_len=max_len, seed=0)
    # Exercises >=2 grid steps and a partial (masked) final block.
    _check(seq_len=40, batch=2, d_model=128, max_len=max_len, seed=0)
    print("KERNEL_OK")
</pallas_src>

<mosaic_0001>
module attributes {stable_mosaic.version = 11 : i64} {
  func.func @_pe_add_kernel(%arg0: i32, %arg1: memref<8x256xf32, #tpu.memory_space<vmem>>, %arg2: memref<8x256xf32, #tpu.memory_space<vmem>>) attributes {dimension_semantics = [#tpu.dimension_semantics<parallel>], iteration_bounds = array<i64: 1>, scalar_prefetch = 0 : i64, scratch_operands = 0 : i64, tpu.core_type = #tpu.core_type<tc>, window_params = [{transform_indices = @transform_0, window_bounds = array<i64: 8, 256>}, {transform_indices = @transform_1, window_bounds = array<i64: 8, 256>}]} {
    %c8_i32 = arith.constant 8 : i32
    %0 = arith.muli %arg0, %c8_i32 : i32
    %1 = tpu.iota {dimensions = array<i32: 1>} : vector<1x128xi32>
    %c1_i32 = arith.constant 1 : i32
    %2 = vector.broadcast %c1_i32 : i32 to vector<1x128xi32>
    %3 = arith.andi %1, %2 : vector<1x128xi32>
    %4 = arith.subi %1, %3 : vector<1x128xi32>
    %5 = arith.sitofp %4 : vector<1x128xi32> to vector<1x128xf32>
    %cst = arith.constant -0.0719557852 : f32
    %6 = vector.broadcast %cst : f32 to vector<1x128xf32>
    %7 = arith.mulf %5, %6 : vector<1x128xf32>
    %8 = math.exp %7 : vector<1x128xf32>
    %c1_i32_0 = arith.constant 1 : i32
    %9 = vector.broadcast %c1_i32_0 : i32 to vector<1x128xi32>
    %10 = arith.andi %1, %9 : vector<1x128xi32>
    %c1_i32_1 = arith.constant 1 : i32
    %11 = vector.broadcast %c1_i32_1 : i32 to vector<1x128xi32>
    %12 = arith.cmpi eq, %10, %11 : vector<1x128xi32>
    %13 = tpu.iota {dimensions = array<i32: 0>} : vector<8x1xi32>
    %14 = vector.broadcast %0 : i32 to vector<8x1xi32>
    %15 = arith.addi %14, %13 : vector<8x1xi32>
    %16 = arith.sitofp %15 : vector<8x1xi32> to vector<8x1xf32>
    %17 = vector.broadcast %16 : vector<8x1xf32> to vector<8x128xf32>
    %18 = vector.broadcast %8 : vector<1x128xf32> to vector<8x128xf32>
    %19 = arith.mulf %17, %18 : vector<8x128xf32>
    %20 = math.cos %19 : vector<8x128xf32>
    %21 = math.sin %19 : vector<8x128xf32>
    %22 = vector.shape_cast %12 : vector<1x128xi1> to vector<1x128xi1>
    %23 = vector.broadcast %22 : vector<1x128xi1> to vector<8x128xi1>
    %24 = arith.select %23, %20, %21 : vector<8x128xi1>, vector<8x128xf32>
    %25 = tpu.concatenate %24, %24 in 1 : vector<8x128xf32>, vector<8x128xf32> -> vector<8x256xf32>
    %c0 = arith.constant 0 : index
    %c0_2 = arith.constant 0 : index
    %26 = vector.load %arg1[%c0, %c0_2] : memref<8x256xf32, #tpu.memory_space<vmem>>, vector<8x256xf32>
    %27 = arith.addf %26, %25 : vector<8x256xf32>
    %c0_3 = arith.constant 0 : index
    %c0_4 = arith.constant 0 : index
    %28 = vector.load %arg2[%c0_3, %c0_4] : memref<8x256xf32, #tpu.memory_space<vmem>>, vector<8x256xf32>
    tpu.vector_store %arg2[%c0_3, %c0_4], %27 {strides = array<i32>} : memref<8x256xf32, #tpu.memory_space<vmem>>, vector<8x256xf32>,
    return
  }
  func.func @transform_0(%arg0: i32) -> (i32, i32) {
    %c0_i32 = arith.constant 0 : i32
    %c0_i32_0 = arith.constant 0 : i32
    return %arg0, %c0_i32 : i32, i32
  }
  func.func @transform_1(%arg0: i32) -> (i32, i32) {
    %c0_i32 = arith.constant 0 : i32
    %c0_i32_0 = arith.constant 0 : i32
    return %arg0, %c0_i32 : i32, i32
  }
}

</mosaic_0001>

<bundles_post_ra>
// kernel: tpu_custom_call.1
= control target key start
LH: loop header
LB: loop body
LE: loop exit
PB: predicated region body
PF: predicated region fallthrough
CT: control target
= control target key end

     0   :  { %6 = vsyncpa [#allocation3], 0  ;;  %s413_s0 = inlined_call_operand.hbm [shape: f32[8,256], index: 0, kind: input, shape index: {}, may-alias: {0,1}]   ;;  %s414_s1 = inlined_call_operand.hbm [shape: f32[8,256], index: 1, kind: output, shape index: {}, may-alias: {0,1}]  }
   0x1   :  { %7 = vsyncpa [#allocation4], 0  ;;  %s342_s6 = smov [#allocation2]   ;;  %s294_s10 = scalar_lea.hbm %s413_s0, 256 }
   0x2   :  { %s14_s7 = sshll.u32 %s342_s6, 4  ;;  %p295_p0 = scmp.ne.s32.totalorder %s413_s0, %s294_s10  ;;  %s15_s7 = int_to_ptr.vmem [resolvable:$true] %s14_s7 }
   0x3   :  { %p298_p1 = scmp.lt.u32.totalorder %s294_s10, %s413_s0 }
   0x5   :  { %p300_p2 = pnand %p298_p1, %p295_p0 }
   0x7   :  { %303 = shalt.err (!%p300_p2)
}
   0x8   :  { %s304_s15 = scalar_lea.vmem %s15_s7, 256  ;;  %p309_p4 = scmp.lt.s32.totalorder %s15_s7, %s15_s7 }
   0x9   :  { %p305_p3 = scmp.ne.s32.totalorder %s15_s7, %s304_s15  ;;  %p310_p5 = scmp.lt.s32.totalorder %s304_s15, %s304_s15 }
   0xb   :  { %p311_p6 = por %p310_p5, %p309_p4 }
   0xd   :  { %p312_p7 = pnand %p311_p6, %p305_p3 }
   0xf   :  { %315 = shalt.err (!%p312_p7)
}
  0x10   :  { %17 = dma.hbm_to_vmem [thread:$0]  %s413_s0, 256, %s15_s7, [#allocation3]  }
  0x11   :  { %338 = dma.done.wait [#allocation3], 256  }
  0x12   :  { %339 = vsyncadd [#allocation3], 4294967040  ;;  %v22_v0 = vlaneseq  ;;  %v343_v22 = vmov 683565275   ;;  %v344_v24 = vmov 2475754826  }
  0x13   :  { %v345_v26 = vmov 2131351028   ;;  %v346_v28 = vmov 2102212464   ;;  %v347_v30 = vmov 920167782  }
  0x14   :  { %v372_v1 = vand.u32 127, %v22_v0  ;;  %v32_v7 = vshrl.u32 %v22_v0, 7  ;;  %v348_v37 = vmov 1326507024   ;;  %s349_s0 = smov [#allocation5]  }
  0x15   :  { %s259_s18 = sshll.u32 %s349_s0, 4  ;;  %s260_s18 = int_to_ptr.vmem [resolvable:$true] %s259_s18 }
  0x16   :  { %v24_v2 = vand.u32 1, %v372_v1  ;;  %v35_v8 = vcvt.s32.f32 %v32_v7  ;;  %s316_s19 = scalar_lea.vmem %s260_s18, 256  ;;  %p321_p9 = scmp.lt.s32.totalorder %s260_s18, %s260_s18 }
  0x17   :  { %p317_p8 = scmp.ne.s32.totalorder %s260_s18, %s316_s19  ;;  %p322_p10 = scmp.lt.s32.totalorder %s316_s19, %s316_s19 }
  0x18   :  { %v25_v3 = vsub.s32 %v372_v1, %v24_v2 }
  0x19   :  { %p323_p11 = por %p322_p10, %p321_p9 }
  0x1a   :  { %v26_v4 = vcvt.s32.f32 %v25_v3 }
  0x1b   :  { %p324_p12 = pnand %p323_p11, %p317_p8 }
  0x1c   :  { %v27_v5 = vmul.f32 -0.071955785, %v26_v4 }
  0x1e   :  { %v28_v6 = vmul.f32 1.442695, %v27_v5 }
  0x20   :  { %288 = vpow2.f32 %v28_v6 }
  0x2a   :  { %v289_v9 = vpop.eup %288 }
  0x2b   :  { %v378_v10 = vmul.f32 %v289_v9, %v35_v8 }
  0x2d   :  { %v40_v11 = vand.u32 2139095040, %v378_v10  ;;  %v37_v13 = vand.u32 2147483647, %v378_v10  ;;  %vm39_vm7 = vcmp.lt.s32.totalorder %v378_v10, 0  ;;  %vm129_vm15 = vweird.f32 %v378_v10 }
  0x2f   :  { %v41_v12 = vshrl.u32 %v40_v11, 23  ;;  %v44_v16 = vand.u32 8388607, %v37_v13  ;;  %vm38_vm8 = vcmp.le.f32.partialorder %v37_v13, 0.7853982 }
  0x31   :  { %v268_v14 = vadd.s32 4294967169, %v41_v12  ;;  %v45_v19 = vor.u32 8388608, %v44_v16 }
  0x33   :  { %v47_v15 = vadd.s32 1, %v268_v14  ;;  %v85_v39 = vshll.u32 %v45_v19, 8 }
  0x35   :  { %vm48_vm0 = vcmp.gt.s32.totalorder %v47_v15, 0 }
  0x36   :  { %v49_v17 = vsel %vm48_vm0, %v47_v15, 0  ;;  %vm30_vm0 = vcmp.eq.s32.totalorder %v24_v2, 1 }
  0x37   :  { %v51_v18 = vand.u32 31, %v49_v17  ;;  %v50_v20 = vshrl.u32 %v49_v17, 5 }
  0x39   :  { %v52_v21 = vsub.s32 32, %v51_v18  ;;  %v54_v23 = vshll.u32 %v343_v22, %v51_v18  ;;  %v57_v25 = vshll.u32 %v344_v24, %v51_v18  ;;  %v60_v27 = vshll.u32 %v345_v26, %v51_v18 }
  0x3a   :  { %v63_v29 = vshll.u32 %v346_v28, %v51_v18  ;;  %v66_v31 = vshll.u32 %v347_v30, %v51_v18  ;;  %vm69_vm1 = vcmp.lt.s32.totalorder %v50_v20, 1  ;;  %vm72_vm2 = vcmp.lt.s32.totalorder %v50_v20, 4 }
  0x3b   :  { %v53_v32 = vshrl.u32 %v343_v22, %v52_v21  ;;  %v55_v33 = vshrl.u32 %v344_v24, %v52_v21  ;;  %v58_v34 = vshrl.u32 %v345_v26, %v52_v21  ;;  %v61_v35 = vshrl.u32 %v346_v28, %v52_v21 }
  0x3c   :  { %v64_v36 = vshrl.u32 %v347_v30, %v52_v21  ;;  %v67_v38 = vshrl.u32 %v348_v37, %v52_v21  ;;  %vm70_vm3 = vcmp.lt.s32.totalorder %v50_v20, 2  ;;  %vm71_vm4 = vcmp.lt.s32.totalorder %v50_v20, 3 }
  0x3d   :  { %v56_v40 = vor.u32 %v55_v33, %v54_v23  ;;  %v59_v41 = vor.u32 %v58_v34, %v57_v25  ;;  %v62_v42 = vor.u32 %v61_v35, %v60_v27 }
  0x3e   :  { %v65_v43 = vor.u32 %v64_v36, %v63_v29  ;;  %v68_v44 = vor.u32 %v67_v38, %v66_v31 }
  0x3f   :  { %v73_v45 = vsel %vm69_vm1, %v53_v32, %v56_v40  ;;  %v74_v46 = vsel %vm72_vm2, %v62_v42, 2102212464  ;;  %v77_v47 = vsel %vm69_vm1, %v56_v40, %v59_v41  ;;  %v81_v48 = vsel %vm69_vm1, %v59_v41, %v62_v42 }
  0x40   :  { %v75_v49 = vsel %vm71_vm4, %v59_v41, %v74_v46  ;;  %v78_v50 = vsel %vm72_vm2, %v65_v43, 920167782  ;;  %v82_v51 = vsel %vm72_vm2, %v68_v44, 1326507024  ;;  %v247_v44 = vld [vmem:[#allocation2] sm:$0xff] }
  0x41   :  { %v79_v52 = vsel %vm71_vm4, %v62_v42, %v78_v50  ;;  %v83_v53 = vsel %vm71_vm4, %v65_v43, %v82_v51  ;;  %v76_v54 = vsel %vm70_vm3, %v73_v45, %v75_v49  ;;  %v248_v45 = vld [vmem:[#allocation2 + $0x8] sm:$0xff] }
  0x42   :  { %v80_v55 = vsel %vm70_vm3, %v77_v47, %v79_v52  ;;  %v84_v56 = vsel %vm70_vm3, %v81_v48, %v83_v53  ;;  %v92_v61 = vmul.u32 %v85_v39, %v76_v54 }
  0x43   :  { %v384_v57 = vmul.u32.u64.low %v85_v39, %v84_v56  ;;  %v385_v58 = vmul.u32.u64.high %v85_v39, %v84_v56, %v384_v57  ;;  %v387_v59 = vmul.u32.u64.low %v85_v39, %v80_v55  ;;  %v388_v60 = vmul.u32.u64.high %v85_v39, %v80_v55, %v387_v59 }
  0x45   :  { %vm94_vm5 = vc.u32 %v385_v58, %v387_v59  ;;  %v95_v62 = vadd.s32 1, %v388_v60  ;;  %v93_v12 = vadd.s32 %v387_v59, %v385_v58 }
  0x47   :  { %v96_v63 = vsel %vm94_vm5, %v95_v62, %v388_v60 }
  0x48   :  { %v97_v0 = vadd.s32 %v96_v63, %v92_v61 }
  0x4a   :  { %v98_v3 = vadd.s32 536870912, %v97_v0 }
  0x4c   :  { %v99_v4 = vshrl.u32 %v98_v3, 30 }
  0x4e   :  { %v100_v5 = vshll.u32 %v99_v4, 30  ;;  %v123_v25 = vsub.s32 4, %v99_v4 }
  0x50   :  { %v101_v6 = vsub.s32 %v97_v0, %v100_v5  ;;  %v124_v28 = vsel %vm39_vm7, %v123_v25, %v99_v4 }
  0x51   :  { %v126_v31 = vsel %vm38_vm8, 0, %v124_v28 }
  0x52   :  { %v103_v7 = vsub.s32 0, %v101_v6  ;;  %v233_v32 = vadd.s32 3, %v126_v31  ;;  %v130_v33 = vand.u32 3, %v126_v31 }
  0x54   :  { %v269_v8 = vmin.u32 %v103_v7, %v101_v6  ;;  %v234_v34 = vand.u32 3, %v233_v32  ;;  %vm135_vm9 = vcmp.eq.s32.totalorder %v130_v33, 2  ;;  %vm132_vm11 = vcmp.eq.s32.totalorder %v130_v33, 0 }
  0x55   :  { %vm131_vm13 = vcmp.lt.s32.totalorder %v130_v33, 2 }
  0x56   :  { %v105_v9 = vclz %v269_v8  ;;  %vm239_vm10 = vcmp.eq.s32.totalorder %v234_v34, 2  ;;  %vm236_vm12 = vcmp.eq.s32.totalorder %v234_v34, 0  ;;  %vm235_vm14 = vcmp.lt.s32.totalorder %v234_v34, 2 }
  0x58   :  { %v270_v11 = vadd.s32 4294967294, %v105_v9 }
  0x5a   :  { %vm271_vm6 = vcmp.lt.s32.totalorder %v270_v11, 0 }
  0x5b   :  { %v108_v14 = vsel %vm271_vm6, 0, %v270_v11 }
  0x5c   :  { %v109_v15 = vsub.s32 32, %v108_v14  ;;  %v110_v16 = vshll.u32 %v101_v6, %v108_v14  ;;  %v113_v17 = vsub.s32 4294967266, %v108_v14 }
  0x5e   :  { %v111_v18 = vshrl.u32 %v93_v12, %v109_v15  ;;  %v114_v19 = vadd.s32 127, %v113_v17 }
  0x60   :  { %v112_v20 = vor.u32 %v111_v18, %v110_v16  ;;  %v115_v21 = vshll.u32 %v114_v19, 23 }
  0x62   :  { %v116_v22 = vor.u32 4788187, %v115_v21  ;;  %v119_v23 = vcvt.s32.f32 %v112_v20 }
  0x64   :  { %v117_v24 = vand.u32 2147483647, %v116_v22 }
  0x66   :  { %v120_v26 = vmul.f32 %v119_v23, %v117_v24 }
  0x68   :  { %v121_v27 = vxor.u32 2147483648, %v120_v26 }
  0x6a   :  { %v122_v29 = vsel %vm39_vm7, %v121_v27, %v120_v26 }
  0x6b   :  { %v125_v30 = vsel %vm38_vm8, %v378_v10, %v122_v29 }
  0x6c   :  { %290 = vcosq.f32 %v125_v30 }
  0x6d   :  { %292 = vsinq.f32 %v125_v30 }
  0x76   :  { %v291_v35 = vpop.eup %290 }
  0x77   :  { %v293_v36 = vpop.eup %292  ;;  %v136_v37 = vxor.u32 2147483648, %v291_v35 }
  0x78   :  { %v133_v13 = vxor.u32 2147483648, %v293_v36 }
  0x79   :  { %v137_v38 = vsel %vm135_vm9, %v136_v37, %v293_v36  ;;  %v241_v39 = vsel %vm239_vm10, %v136_v37, %v293_v36 }
  0x7a   :  { %v134_v40 = vsel %vm132_vm11, %v291_v35, %v133_v13  ;;  %v238_v41 = vsel %vm236_vm12, %v291_v35, %v133_v13 }
  0x7b   :  { %v138_v42 = vsel %vm131_vm13, %v134_v40, %v137_v38  ;;  %v242_v43 = vsel %vm235_vm14, %v238_v41, %v241_v39 }
  0x7c   :  { %v139_v46 = vsel %vm129_vm15, nan, %v138_v42  ;;  %v243_v47 = vsel %vm129_vm15, nan, %v242_v43 }
  0x7d   :  { %v246_v48 = vsel %vm30_vm0, %v139_v46, %v243_v47 }
  0x7e   :  { %v249_v49 = vadd.f32 %v247_v44, %v246_v48  ;;  %v250_v50 = vadd.f32 %v248_v45, %v246_v48 }
  0x80   :  { %251 = vst [vmem:[#allocation5] sm:$0xff] %v249_v49  ;;  %252 = vst [vmem:[#allocation5 + $0x8] sm:$0xff] %v250_v50 }
  0x81   :  { %327 = shalt.err (!%p324_p12)
}
  0x82   :  { %s328_s22 = scalar_lea.hbm %s414_s1, 256 }
  0x83   :  { %p329_p13 = scmp.ne.s32.totalorder %s414_s1, %s328_s22  ;;  %p332_p0 = scmp.lt.u32.totalorder %s328_s22, %s414_s1 }
  0x85   :  { %p334_p1 = pnand %p332_p0, %p329_p13 }
  0x87   :  { %337 = shalt.err (!%p334_p1)
}
  0x88   :  { %262 = dma.vmem_to_hbm [thread:$0]  %s260_s18, 256, %s414_s1, [#allocation4]  }
  0x89   :  { %340 = dma.done.wait [#allocation4], 256  }
  0x8a   :  { %341 = vsyncadd [#allocation4], 4294967040 }
  0x8b   :  { %266 = vsyncpa [#allocation3], 1 }
  0x8c   :  { %267 = vsyncpa [#allocation4], 1 }

</bundles_post_ra>
